<compile_context>
chip_gen: v5e
topology: v5e:2x2
jax: 0.10.0
libtpu: 0.0.40
codegen_flags: <defaults>
</compile_context>

<pallas_src>
import math

import jax
import jax.numpy as jnp
from jax.experimental import pallas as pl
from jax.experimental.pallas import tpu as pltpu


def _mlp_kernel(x_ref, w1_ref, b1_ref, w2_ref, b2_ref, o_ref):
    # Layer 1: (TM, Dp) @ (Dp, Hp) on the MXU, f32 accumulation.
    h = jnp.dot(x_ref[...], w1_ref[...], preferred_element_type=jnp.float32)
    # Bias + ReLU in f32 on the VPU (v5e has no bf16 VPU path).
    h = jnp.maximum(h + b1_ref[...], 0.0)
    # Layer 2 (Hp -> 1): VPU multiply + lane reduction instead of a 1-wide MXU
    # matmul (which would use only 1 of 128/256 MXU output lanes).
    z = jnp.sum(h * w2_ref[...], axis=-1, keepdims=True)
    # b2 is a scalar living in SMEM.
    o_ref[...] = jax.nn.sigmoid(z + b2_ref[0, 0]).astype(o_ref.dtype)


def _round_up(n: int, m: int) -> int:
    return ((n + m - 1) // m) * m


def simple_mlp_forward(x, w1, b1, w2, b2, *, block_rows=512, mxu_dtype=jnp.float32):
    """Fused SimpleMLP forward: sigmoid(relu(x @ w1 + b1) @ w2 + b2).

    x : (B, D) float32
    w1: (D, H)   (transposed vs. PyTorch's (out, in) layout -> kernel does x @ W)
    b1: (1, H)
    w2: (H, 1)
    b2: (1, 1)
    returns (B, 1) float32
    """
    B, D = x.shape
    H = w1.shape[1]
    assert w1.shape == (D, H) and b1.shape == (1, H)
    assert w2.shape == (H, 1) and b2.shape == (1, 1)

    # Pad feature dims up to full 128-lane vregs / MXU tiles (exact-zero padding
    # leaves the math unchanged), and pad the batch to a multiple of the row tile.
    Dp = _round_up(D, 128)
    Hp = _round_up(H, 128)
    TM = min(block_rows, _round_up(B, 8))
    Bp = _round_up(B, TM)

    xp = jnp.pad(x, ((0, Bp - B), (0, Dp - D))).astype(mxu_dtype)
    w1p = jnp.pad(w1, ((0, Dp - D), (0, Hp - H))).astype(mxu_dtype)
    b1p = jnp.pad(b1, ((0, 0), (0, Hp - H))).astype(jnp.float32)
    w2p = jnp.pad(w2.T, ((0, 0), (0, Hp - H))).astype(jnp.float32)  # (1, Hp) row
    b2p = b2.astype(jnp.float32)                                    # (1, 1) scalar

    grid = (Bp // TM,)
    # VMEM budget (f32, TM=512, Dp=Hp=128): 2*TM*Dp*4 (double-buffered x tile)
    # + Dp*Hp*4 (resident w1) + TM*Hp*4 (h) + out tiles  ~= 1 MiB, far below the
    # 32 MiB scoped default on v5e/v6e/v7x -- no vmem_limit override needed.
    out = pl.pallas_call(
        _mlp_kernel,
        out_shape=jax.ShapeDtypeStruct((Bp, 1), jnp.float32),
        grid_spec=pltpu.PrefetchScalarGridSpec(
            num_scalar_prefetch=0,
            grid=grid,
            in_specs=[
                # Activations: streamed per grid step.
                pl.BlockSpec((TM, Dp), lambda i: (i, 0),
                             memory_space=pltpu.MemorySpace.VMEM),
                # Weights / biases: constant index_map -> fetched once, VMEM-resident.
                pl.BlockSpec((Dp, Hp), lambda i: (0, 0),
                             memory_space=pltpu.MemorySpace.VMEM),
                pl.BlockSpec((1, Hp), lambda i: (0, 0),
                             memory_space=pltpu.MemorySpace.VMEM),
                pl.BlockSpec((1, Hp), lambda i: (0, 0),
                             memory_space=pltpu.MemorySpace.VMEM),
                # Single scalar bias: SMEM, no vreg/VMEM block or per-step DMA.
                pl.BlockSpec(memory_space=pltpu.MemorySpace.SMEM),
            ],
            # Output stays (B, 1); at 4 B/row it is negligible next to the input
            # stream (a lane-dense (Bp//128, 128) slab is only worth it if output
            # bandwidth ever matters).
            out_specs=pl.BlockSpec((TM, 1), lambda i: (i, 0),
                                   memory_space=pltpu.MemorySpace.VMEM),
        ),
        compiler_params=pltpu.CompilerParams(
            # Batch tiles are independent -> v7x's 2 TensorCores split the grid;
            # harmless no-op on v5e/v6e.
            dimension_semantics=("parallel",),
        ),
    )(xp, w1p, b1p, w2p, b2p)
    return out[:B]


def init_params(key, input_dim, hidden_units, output_dim=1):
    """PyTorch nn.Linear-style init (uniform +/- 1/sqrt(fan_in)), stored x @ W layout."""
    k1, k2, k3, k4 = jax.random.split(key, 4)
    bound1 = 1.0 / math.sqrt(input_dim)
    bound2 = 1.0 / math.sqrt(hidden_units)
    w1 = jax.random.uniform(k1, (input_dim, hidden_units), jnp.float32, -bound1, bound1)
    b1 = jax.random.uniform(k2, (1, hidden_units), jnp.float32, -bound1, bound1)
    w2 = jax.random.uniform(k3, (hidden_units, output_dim), jnp.float32, -bound2, bound2)
    b2 = jax.random.uniform(k4, (1, output_dim), jnp.float32, -bound2, bound2)
    return w1, b1, w2, b2


def reference_forward(x, w1, b1, w2, b2):
    h = jnp.maximum(x @ w1 + b1, 0.0)
    return jax.nn.sigmoid(h @ w2 + b2)


if __name__ == "__main__":
    key = jax.random.PRNGKey(0)
    kx, kp, kb = jax.random.split(key, 3)

    input_dim, hidden_units, output_dim = 16, 32, 1
    w1, b1, w2, b2 = init_params(kp, input_dim, hidden_units, output_dim)

    # Small shape consistent with the module spec.
    batch = 8
    x = jax.random.normal(kx, (batch, input_dim), jnp.float32)
    out = jax.block_until_ready(simple_mlp_forward(x, w1, b1, w2, b2))
    ref = reference_forward(x, w1, b1, w2, b2)
    assert out.shape == (batch, output_dim), out.shape
    assert jnp.allclose(out, ref, atol=1e-5, rtol=1e-5), "f32 small-batch mismatch"

    # Batch-tiled path: 2 x 512-row grid steps, weights resident in VMEM.
    big_batch = 1024
    xb = jax.random.normal(kb, (big_batch, input_dim), jnp.float32)
    out_big = jax.block_until_ready(simple_mlp_forward(xb, w1, b1, w2, b2))
    ref_big = reference_forward(xb, w1, b1, w2, b2)
    assert out_big.shape == (big_batch, output_dim), out_big.shape
    assert jnp.allclose(out_big, ref_big, atol=1e-5, rtol=1e-5), "f32 tiled mismatch"

    # Optional bf16-MXU path (v6e/v7x): bf16 operands, f32 accumulation.
    out_bf16 = jax.block_until_ready(
        simple_mlp_forward(xb, w1, b1, w2, b2, mxu_dtype=jnp.bfloat16))
    assert jnp.allclose(out_bf16, ref_big, atol=2e-2), "bf16 MXU path mismatch"

    print("KERNEL_OK")
</pallas_src>

<mosaic_0001>
module attributes {stable_mosaic.version = 11 : i64} {
  func.func @_mlp_kernel(%arg0: i32, %arg1: memref<8x128xf32, #tpu.memory_space<vmem>>, %arg2: memref<128x128xf32, #tpu.memory_space<vmem>>, %arg3: memref<1x128xf32, #tpu.memory_space<vmem>>, %arg4: memref<1x128xf32, #tpu.memory_space<vmem>>, %arg5: memref<1x1xf32, #tpu.memory_space<smem>>, %arg6: memref<8x1xf32, #tpu.memory_space<vmem>>) attributes {dimension_semantics = [#tpu.dimension_semantics<parallel>], iteration_bounds = array<i64: 1>, scalar_prefetch = 0 : i64, scratch_operands = 0 : i64, tpu.core_type = #tpu.core_type<tc>, window_params = [{transform_indices = @transform_0, window_bounds = array<i64: 8, 128>}, {pipeline_mode = #tpu.pipeline_mode<synchronous>, transform_indices = @transform_1, window_bounds = array<i64: 128, 128>}, {pipeline_mode = #tpu.pipeline_mode<synchronous>, transform_indices = @transform_2, window_bounds = array<i64: 1, 128>}, {pipeline_mode = #tpu.pipeline_mode<synchronous>, transform_indices = @transform_3, window_bounds = array<i64: 1, 128>}, {transform_indices = @transform_4, window_bounds = array<i64: 1, 1>}, {transform_indices = @transform_5, window_bounds = array<i64: 8, 1>}]} {
    %c0 = arith.constant 0 : index
    %c0_0 = arith.constant 0 : index
    %0 = vector.load %arg1[%c0, %c0_0] : memref<8x128xf32, #tpu.memory_space<vmem>>, vector<8x128xf32>
    %c0_1 = arith.constant 0 : index
    %c0_2 = arith.constant 0 : index
    %1 = vector.load %arg2[%c0_1, %c0_2] : memref<128x128xf32, #tpu.memory_space<vmem>>, vector<128x128xf32>
    %cst = arith.constant dense<0.000000e+00> : vector<8x128xf32>
    %2 = tpu.matmul %0, %1, %cst {dimension_numbers = #tpu.dot_dimension_numbers<[1], [0], [0], [1], [0, 0, 1, 1], [], []>} : vector<8x128xf32>, vector<128x128xf32>, vector<8x128xf32> -> vector<8x128xf32>
    %c0_3 = arith.constant 0 : index
    %c0_4 = arith.constant 0 : index
    %3 = vector.load %arg3[%c0_3, %c0_4] : memref<1x128xf32, #tpu.memory_space<vmem>>, vector<1x128xf32>
    %4 = vector.broadcast %3 : vector<1x128xf32> to vector<8x128xf32>
    %5 = arith.addf %2, %4 : vector<8x128xf32>
    %cst_5 = arith.constant 0.000000e+00 : f32
    %6 = vector.broadcast %cst_5 : f32 to vector<8x128xf32>
    %7 = arith.maximumf %5, %6 : vector<8x128xf32>
    %c0_6 = arith.constant 0 : index
    %c0_7 = arith.constant 0 : index
    %8 = vector.load %arg4[%c0_6, %c0_7] : memref<1x128xf32, #tpu.memory_space<vmem>>, vector<1x128xf32>
    %9 = vector.broadcast %8 : vector<1x128xf32> to vector<8x128xf32>
    %10 = arith.mulf %7, %9 : vector<8x128xf32>
    %cst_8 = arith.constant dense<0.000000e+00> : vector<8xf32>
    %11 = vector.multi_reduction <add>, %10, %cst_8 [1] : vector<8x128xf32> to vector<8xf32>
    %12 = vector.shape_cast %11 : vector<8xf32> to vector<8x1xf32>
    %c0_9 = arith.constant 0 : index
    %c0_10 = arith.constant 0 : index
    %13 = memref.load %arg5[%c0_9, %c0_10] : memref<1x1xf32, #tpu.memory_space<smem>>
    %14 = vector.broadcast %13 : f32 to vector<8x1xf32>
    %15 = arith.addf %12, %14 : vector<8x1xf32>
    %16 = arith.negf %15 : vector<8x1xf32>
    %17 = math.exp %16 : vector<8x1xf32>
    %cst_11 = arith.constant 1.000000e+00 : f32
    %18 = vector.broadcast %cst_11 : f32 to vector<8x1xf32>
    %19 = arith.addf %18, %17 : vector<8x1xf32>
    %20 = arith.divf %18, %19 : vector<8x1xf32>
    %c0_12 = arith.constant 0 : index
    %c0_13 = arith.constant 0 : index
    %21 = vector.load %arg6[%c0_12, %c0_13] : memref<8x1xf32, #tpu.memory_space<vmem>>, vector<8x1xf32>
    tpu.vector_store %arg6[%c0_12, %c0_13], %20 {strides = array<i32>} : memref<8x1xf32, #tpu.memory_space<vmem>>, vector<8x1xf32>,
    return
  }
  func.func @transform_0(%arg0: i32) -> (i32, i32) {
    %c0_i32 = arith.constant 0 : i32
    %c0_i32_0 = arith.constant 0 : i32
    return %arg0, %c0_i32 : i32, i32
  }
  func.func @transform_1(%arg0: i32) -> (i32, i32) {
    %c0_i32 = arith.constant 0 : i32
    %c0_i32_0 = arith.constant 0 : i32
    %c0_i32_1 = arith.constant 0 : i32
    return %c0_i32, %c0_i32_0 : i32, i32
  }
  func.func @transform_2(%arg0: i32) -> (i32, i32) {
    %c0_i32 = arith.constant 0 : i32
    %c0_i32_0 = arith.constant 0 : i32
    %c0_i32_1 = arith.constant 0 : i32
    return %c0_i32, %c0_i32_0 : i32, i32
  }
  func.func @transform_3(%arg0: i32) -> (i32, i32) {
    %c0_i32 = arith.constant 0 : i32
    %c0_i32_0 = arith.constant 0 : i32
    %c0_i32_1 = arith.constant 0 : i32
    return %c0_i32, %c0_i32_0 : i32, i32
  }
  func.func @transform_4(%arg0: i32) -> (i32, i32) {
    %c0_i32 = arith.constant 0 : i32
    %c0_i32_0 = arith.constant 0 : i32
    %c0_i32_1 = arith.constant 0 : i32
    return %c0_i32, %c0_i32_0 : i32, i32
  }
  func.func @transform_5(%arg0: i32) -> (i32, i32) {
    %c0_i32 = arith.constant 0 : i32
    %c0_i32_0 = arith.constant 0 : i32
    return %arg0, %c0_i32 : i32, i32
  }
}

</mosaic_0001>

<bundles_post_ra>
// kernel: tpu_custom_call.1
= control target key start
LH: loop header
LB: loop body
LE: loop exit
PB: predicated region body
PF: predicated region fallthrough
CT: control target
= control target key end

     0   :  { %11 = vsyncpa [#allocation4], 0  ;;  %s245_s0 = inlined_call_operand.hbm [shape: f32[8,128], index: 0, kind: input, shape index: {}]   ;;  %s246_s1 = inlined_call_operand.hbm [shape: f32[128,128], index: 1, kind: input, shape index: {}]   ;;  %s247_s2 = inlined_call_operand.vmem [shape: f32[1,128], index: 2, kind: input, shape index: {}]   ;;  %s248_s3 = inlined_call_operand.vmem [shape: f32[1,128], index: 3, kind: input, shape index: {}]   ;;  %s249_s4 = inlined_call_operand.<no memory space> [shape: f32[1,1], index: 4, kind: input, shape index: {}]   ;;  %s250_s5 = inlined_call_operand.vmem [shape: f32[8,1], index: 5, kind: output, shape index: {}]  }
   0x1   :  { %s18_s20 = sshll.u32 %s245_s0, 4  ;;  %s19_s20 = int_to_ptr.hbm [resolvable:$true] %s18_s20 }
   0x2   :  { %12 = vsyncpa [#allocation6], 0  ;;  %s193_s21 = smov [#allocation3]   ;;  %s28_s25 = sshll.u32 %s246_s1, 4  ;;  %s29_s25 = int_to_ptr.hbm [resolvable:$true] %s28_s25 }
   0x3   :  { %s20_s22 = sshll.u32 %s193_s21, 4  ;;  %s194_s26 = smov [#allocation5]   ;;  %s21_s22 = int_to_ptr.vmem [resolvable:$true] %s20_s22 }
   0x4   :  { %23 = dma.hbm_to_vmem [thread:$0]  %s19_s20, 128, %s21_s22, [#allocation4]  }
   0x5   :  { %s30_s27 = sshll.u32 %s194_s26, 4  ;;  %s195_s28 = smov 128   ;;  %s31_s27 = int_to_ptr.vmem [resolvable:$true] %s30_s27 }
   0x6   :  { %s196_s29 = smov 8  }
   0x7   :  { %36 = dma.hbm_to_vmem [thread:$0]  %s29_s25, 2048, %s31_s27, [#allocation6], %s195_s28, %s195_s28, %s196_s29  }
   0x8   :  { %189 = dma.done.wait [#allocation4], 128  }
   0x9   :  { %190 = vsyncadd [#allocation4], 4294967168 }
   0xa   :  { %191 = dma.done.wait [#allocation6], 2048  }
   0xb   :  { %192 = vsyncadd [#allocation6], 4294965248  ;;  %v67_v0 = vld [vmem:[#allocation5 + $0x78] sm:$0xff]  ;;  %v66_v1 = vld [vmem:[#allocation5 + $0x70] sm:$0xff]  ;;  %v101_v23 = vstv %s249_s4  ;;  %vm122_vm3 = vcmask 7168  }
   0xc   :  { %72 = vmatpush.msra.mxu0 %v67_v0  ;;  %v65_v2 = vld [vmem:[#allocation5 + $0x68] sm:$0xff]  ;;  %v64_v3 = vld [vmem:[#allocation5 + $0x60] sm:$0xff]  ;;  %v63_v4 = vld [vmem:[#allocation5 + $0x58] sm:$0xff] }
   0xd   :  { %v62_v5 = vld [vmem:[#allocation5 + $0x50] sm:$0xff]  ;;  %v61_v6 = vld [vmem:[#allocation5 + $0x48] sm:$0xff]  ;;  %v60_v7 = vld [vmem:[#allocation5 + $0x40] sm:$0xff] }
   0xe   :  { %73 = vmatpush.msra.mxu0 %v66_v1  ;;  %v59_v8 = vld [vmem:[#allocation5 + $0x38] sm:$0xff]  ;;  %v58_v9 = vld [vmem:[#allocation5 + $0x30] sm:$0xff]  ;;  %v57_v10 = vld [vmem:[#allocation5 + $0x28] sm:$0xff] }
   0xf   :  { %v56_v11 = vld [vmem:[#allocation5 + $0x20] sm:$0xff]  ;;  %v55_v12 = vld [vmem:[#allocation5 + $0x18] sm:$0xff]  ;;  %v54_v13 = vld [vmem:[#allocation5 + $0x10] sm:$0xff] }
  0x10   :  { %74 = vmatpush.msra.mxu0 %v65_v2  ;;  %v53_v14 = vld [vmem:[#allocation5 + $0x8] sm:$0xff]  ;;  %v52_v15 = vld [vmem:[#allocation5] sm:$0xff]  ;;  %v51_v16 = vld [vmem:[#allocation3] sm:$0xff] }
  0x11   :  { %v135_v17 = vld [vmem:[%s247_s2] ss:$0 sm:$0xff] }
  0x12   :  { %75 = vmatpush.msra.mxu0 %v64_v3  ;;  %v136_v20 = vld [vmem:[%s248_s3] ss:$0 sm:$0xff] }
  0x14   :  { %76 = vmatpush.msra.mxu0 %v63_v4 }
  0x16   :  { %77 = vmatpush.msra.mxu0 %v62_v5 }
  0x18   :  { %78 = vmatpush.msra.mxu0 %v61_v6 }
  0x1a   :  { %79 = vmatpush.msra.mxu0 %v60_v7 }
  0x1c   :  { %80 = vmatpush.msra.mxu0 %v59_v8 }
  0x1e   :  { %81 = vmatpush.msra.mxu0 %v58_v9 }
  0x20   :  { %82 = vmatpush.msra.mxu0 %v57_v10 }
  0x22   :  { %83 = vmatpush.msra.mxu0 %v56_v11 }
  0x24   :  { %84 = vmatpush.msra.mxu0 %v55_v12 }
  0x26   :  { %85 = vmatpush.msra.mxu0 %v54_v13 }
  0x28   :  { %86 = vmatpush.msra.mxu0 %v53_v14 }
  0x2a   :  { %87 = vmatpush.msra.mxu0 %v52_v15 }
  0x2b   :  { %88 = vmatmul.f32.vlgmr.msra.gmra.mxu0 %v51_v16 }
  0xa8   :  { %v89_v18 = vpop.f32.mrf.mxu0 }
  0xa9   :  { %v90_v19 = vadd.f32 %v135_v17, %v89_v18 }
  0xab   :  { %v92_v21 = vmax.f32 %v90_v19, 0.0 }
  0xad   :  { %v97_v22 = vmul.f32 %v136_v20, %v92_v21 }
  0xaf   :  { %98 = vadd.xlane.f32.xlu0 %v97_v22 }
 0x122   :  { %v99_v24 = vpop.xlane.xlu0 %98 }
 0x123   :  { %v102_v25 = vadd.f32 %v101_v23, %v99_v24 }
 0x125   :  { %v130_v26 = vmul.f32 -1.442695, %v102_v25 }
 0x127   :  { %137 = vpow2.f32 %v130_v26 }
 0x12d   :  { %v138_v27 = vpop.eup %137 }
 0x12e   :  { %v106_v28 = vadd.f32 1.0, %v138_v27 }
 0x130   :  { %139 = vrcp.f32 %v106_v28  ;;  %v118_v32 = vand.u32 2147483648, %v106_v28  ;;  %v116_v34 = vand.u32 2147483647, %v106_v28  ;;  %vm112_vm1 = vweird.f32 %v106_v28 }
 0x132   :  { %v119_v36 = vor.u32 1.1754944e-38, %v118_v32  ;;  %vm117_vm4 = vcmp.eq.f32.partialorder %v116_v34, 8.507059e+37 }
 0x136   :  { %v140_v29 = vpop.eup %139 }
 0x137   :  { %v108_v30 = vmul.f32 %v140_v29, %v106_v28  ;;  %vm113_vm0 = vweird.f32 %v140_v29 }
 0x138   :  { %vm114_vm2 = vmor %vm112_vm1, %vm113_vm0 }
 0x139   :  { %v109_v31 = vsub.f32 1.0, %v108_v30 }
 0x13b   :  { %v110_v33 = vmul.f32 %v140_v29, %v109_v31 }
 0x13d   :  { %v111_v35 = vadd.f32 %v140_v29, %v110_v33 }
 0x13f   :  { %v115_v37 = vsel %vm114_vm2, %v140_v29, %v111_v35 }
 0x140   :  { %v120_v38 = vsel %vm117_vm4, %v119_v36, %v115_v37 }
 0x141   :  { %123 = vst.msk [vmem:[%s250_s5] sm:$0xff] %vm122_vm3, %v120_v38 }
 0x142   :  { %128 = vsyncpa [#allocation4], 1 }
 0x143   :  { %129 = vsyncpa [#allocation6], 1 }

</bundles_post_ra>
